<compile_context>
chip_gen: v5e
topology: v5e:2x2
jax: 0.10.0
libtpu: 0.0.40
codegen_flags: <defaults>
</compile_context>

<pallas_src>
import jax
import jax.numpy as jnp
from jax.experimental import pallas as pl
from jax.experimental.pallas import tpu as pltpu

_LANES = 128
# Per single input block (the pipeline double-buffers it); chosen so that
# 2x input + 2x output buffers stay well under 64 MiB (v7x) / default limits.
_BLOCK_BUDGET_BYTES = 8 * 1024 * 1024


def _maxpool_kernel(x_ref, o_ref):
    # x_ref block: (1, c_tile, s_tile, 128). C is a leading (non-vreg) axis,
    # so the reduction is pure elementwise VPU maxes, hidden behind HBM DMA.
    c = pl.program_id(2)
    blk = jnp.max(x_ref[...], axis=1)            # (1, s_tile, 128)

    @pl.when(c == 0)
    def _():
        o_ref[...] = blk

    @pl.when(c > 0)
    def _():
        # Output block is resident across the (arbitrary) C-chunk axis:
        # running-max accumulation.
        o_ref[...] = jnp.maximum(o_ref[...], blk)


def _pick_tiles(C, S, itemsize):
    # Spatial (sublane) tile: multiple of 8, or full extent if S % 8 != 0
    # (the (8,128) block rule).
    if S % 8 == 0:
        s_cap = (_BLOCK_BUDGET_BYTES // max(1, C * _LANES * itemsize)) // 8 * 8
        s_tile = max(8, min(S, 512, s_cap))
    else:
        s_tile = S
    # Channel tile: keep C whole unless the block blows the budget; any chunk
    # must divide C exactly (padding on the reduced axis would corrupt the max).
    c_tile = C
    if C * s_tile * _LANES * itemsize > _BLOCK_BUDGET_BYTES:
        for d in range(C, 0, -1):
            if C % d == 0 and d * s_tile * _LANES * itemsize <= _BLOCK_BUDGET_BYTES:
                c_tile = d
                break
    return c_tile, s_tile


def custom_max_pool(x: jax.Array, dim: int = 1) -> jax.Array:
    """Equivalent of torch: x.max(dim=dim)[0] for a 4-D NCHW input."""
    if x.ndim != 4 or dim != 1 or (x.shape[2] * x.shape[3]) % _LANES != 0:
        # TODO(synk): padded/ragged path for H*W not a multiple of 128 and for
        # generic dims; plain XLA reduce is used there instead.
        return jnp.max(x, axis=dim)

    N, C, H, W = x.shape
    HW = H * W
    S = HW // _LANES
    itemsize = jnp.dtype(x.dtype).itemsize

    c_tile, s_tile = _pick_tiles(C, S, itemsize)
    grid = (N, pl.cdiv(S, s_tile), C // c_tile)

    # Lane-dense view: (N, C, S, 128). Free for contiguous NCHW; done in the
    # wrapper so the kernel only ever sees dense (sublane, 128-lane) tiles.
    x_view = x.reshape(N, C, S, _LANES)

    out = pl.pallas_call(
        _maxpool_kernel,
        out_shape=jax.ShapeDtypeStruct((N, S, _LANES), x.dtype),
        grid_spec=pltpu.PrefetchScalarGridSpec(
            num_scalar_prefetch=0,
            grid=grid,
            in_specs=[
                pl.BlockSpec((1, c_tile, s_tile, _LANES),
                             lambda n, s, c: (n, c, s, 0)),
            ],
            out_specs=pl.BlockSpec((1, s_tile, _LANES),
                                   lambda n, s, c: (n, s, 0)),
        ),
        compiler_params=pltpu.CompilerParams(
            # Batch + spatial tiles parallel (2 TCs on v7x both get work even
            # at small N); the C-chunk axis is a reduction -> arbitrary.
            dimension_semantics=("parallel", "parallel", "arbitrary"),
            vmem_limit_bytes=64 * 1024 * 1024,
        ),
    )(x_view)

    return out.reshape(N, H, W)


if __name__ == "__main__":
    key = jax.random.PRNGKey(0)
    k0, k1 = jax.random.split(key)

    # Small NCHW input consistent with the module's forward (dim=1 reduce).
    x = jax.random.normal(k0, (2, 4, 16, 16), dtype=jnp.float32)
    out = jax.block_until_ready(custom_max_pool(x))
    ref = jnp.max(x, axis=1)
    assert out.shape == ref.shape, (out.shape, ref.shape)
    assert jnp.allclose(out, ref), "mismatch vs reference (2, 4, 16, 16)"

    # Exercises the S % 8 != 0 (full-extent sublane tile) path.
    x2 = jax.random.normal(k1, (2, 8, 16, 24), dtype=jnp.float32)
    out2 = jax.block_until_ready(custom_max_pool(x2))
    assert jnp.allclose(out2, jnp.max(x2, axis=1)), "mismatch vs reference (2, 8, 16, 24)"

    print("KERNEL_OK")
</pallas_src>

<mosaic_0001>
module attributes {stable_mosaic.version = 11 : i64} {
  func.func @_maxpool_kernel(%arg0: i32, %arg1: i32, %arg2: i32, %arg3: memref<1x4x2x128xf32, #tpu.memory_space<vmem>>, %arg4: memref<1x2x128xf32, #tpu.memory_space<vmem>>) attributes {dimension_semantics = [#tpu.dimension_semantics<parallel>, #tpu.dimension_semantics<parallel>, #tpu.dimension_semantics<arbitrary>], iteration_bounds = array<i64: 2, 1, 1>, scalar_prefetch = 0 : i64, scratch_operands = 0 : i64, tpu.core_type = #tpu.core_type<tc>, window_params = [{transform_indices = @transform_0, window_bounds = array<i64: 1, 4, 2, 128>}, {transform_indices = @transform_1, window_bounds = array<i64: 1, 2, 128>}]} {
    %c0 = arith.constant 0 : index
    %c0_0 = arith.constant 0 : index
    %c0_1 = arith.constant 0 : index
    %c0_2 = arith.constant 0 : index
    %0 = vector.load %arg3[%c0, %c0_0, %c0_1, %c0_2] : memref<1x4x2x128xf32, #tpu.memory_space<vmem>>, vector<1x4x2x128xf32>
    %cst = arith.constant dense<0xFF800000> : vector<1x2x128xf32>
    %1 = vector.multi_reduction <maximumf>, %0, %cst [1] : vector<1x4x2x128xf32> to vector<1x2x128xf32>
    %c0_i32 = arith.constant 0 : i32
    %2 = arith.cmpi eq, %arg2, %c0_i32 : i32
    %3 = arith.extui %2 : i1 to i32
    %c0_i32_3 = arith.constant 0 : i32
    %4 = arith.cmpi ne, %3, %c0_i32_3 : i32
    scf.if %4 {
      %c0_6 = arith.constant 0 : index
      %c0_7 = arith.constant 0 : index
      %c0_8 = arith.constant 0 : index
      %8 = vector.load %arg4[%c0_6, %c0_7, %c0_8] : memref<1x2x128xf32, #tpu.memory_space<vmem>>, vector<1x2x128xf32>
      tpu.vector_store %arg4[%c0_6, %c0_7, %c0_8], %1 {strides = array<i32>} : memref<1x2x128xf32, #tpu.memory_space<vmem>>, vector<1x2x128xf32>,
    } else {
    }
    %c0_i32_4 = arith.constant 0 : i32
    %5 = arith.cmpi sgt, %arg2, %c0_i32_4 : i32
    %6 = arith.extui %5 : i1 to i32
    %c0_i32_5 = arith.constant 0 : i32
    %7 = arith.cmpi ne, %6, %c0_i32_5 : i32
    scf.if %7 {
      %c0_6 = arith.constant 0 : index
      %c0_7 = arith.constant 0 : index
      %c0_8 = arith.constant 0 : index
      %8 = vector.load %arg4[%c0_6, %c0_7, %c0_8] : memref<1x2x128xf32, #tpu.memory_space<vmem>>, vector<1x2x128xf32>
      %9 = arith.maximumf %8, %1 : vector<1x2x128xf32>
      %c0_9 = arith.constant 0 : index
      %c0_10 = arith.constant 0 : index
      %c0_11 = arith.constant 0 : index
      %10 = vector.load %arg4[%c0_9, %c0_10, %c0_11] : memref<1x2x128xf32, #tpu.memory_space<vmem>>, vector<1x2x128xf32>
      tpu.vector_store %arg4[%c0_9, %c0_10, %c0_11], %9 {strides = array<i32>} : memref<1x2x128xf32, #tpu.memory_space<vmem>>, vector<1x2x128xf32>,
    } else {
    }
    return
  }
  func.func @transform_0(%arg0: i32, %arg1: i32, %arg2: i32) -> (i32, i32, i32, i32) {
    %c0_i32 = arith.constant 0 : i32
    %c0_i32_0 = arith.constant 0 : i32
    return %arg0, %arg2, %arg1, %c0_i32 : i32, i32, i32, i32
  }
  func.func @transform_1(%arg0: i32, %arg1: i32, %arg2: i32) -> (i32, i32, i32) {
    %c0_i32 = arith.constant 0 : i32
    %c0_i32_0 = arith.constant 0 : i32
    return %arg0, %arg1, %c0_i32 : i32, i32, i32
  }
}

</mosaic_0001>

<bundles_post_ra>
// kernel: tpu_custom_call.1
= control target key start
LH: loop header
LB: loop body
LE: loop exit
PB: predicated region body
PF: predicated region fallthrough
CT: control target
= control target key end

     0   :  { %6 = vsyncpa [#allocation3], 0  ;;  %s619_s0 = inlined_call_operand.hbm [shape: f32[2,4,2,128], index: 0, kind: input, shape index: {}]   ;;  %s620_s1 = inlined_call_operand.hbm [shape: f32[2,2,128], index: 1, kind: output, shape index: {}]  }
   0x1   :  { %8 = vsyncpa [#allocation3 + $0x1], 0 }
   0x2   :  { %9 = vsyncpa [#allocation4], 0 }
   0x3   :  { %11 = vsyncpa [#allocation4 + $0x1], 0  ;;  %s498_s6 = smov 0   ;;  %s500_s7 = smov 0  }
   0x4   :  { %s502_s8 = smov 0   ;;  %s504_s9 = smov 0  }
   0x5   :  { %s506_s10 = smov 0   ;;  %s508_s11 = smov 0  }
   0x6 LB: > { %s293_s12 = sadd.s32 4294967295, %s484_s11   ;;  %s294_s13 = sadd.s32 4294967294, %s484_s11   ;;  %s484_s11 = sphi %s508_s11, %s17_s11   ;;  %s480_s10 = sphi %s506_s10, %s629_s10   ;;  %s476_s9 = sphi %s504_s9, %s628_s9   ;;  %s472_s8 = sphi %s502_s8, %s627_s8   ;;  %s468_s7 = sphi %s500_s7, %s626_s7   ;;  %s464_s6 = sphi %s498_s6, %s625_s6  }
   0x7   : > { %s36_s14 = sadd.s32 1, %s480_s10  ;;  %s47_s15 = sadd.s32 1, %s472_s8 }
   0x8   : > { %p38_p0 = scmp.ge.s32.totalorder %s36_s14, 2  ;;  %p54_p1 = scmp.ne.s32.totalorder %s472_s8, %s468_s7 }
   0x9   : > { %p55_p2 = scmp.eq.s32.totalorder %s484_s11, 0  ;;  %p60_p3 = scmp.ne.s32.totalorder %s468_s7, %s464_s6 }
   0xa   : > { %s631_s14 = smov (%p38_p0, %s36_s14), 0  ;;  %p61_p5 = scmp.eq.s32.totalorder %s293_s12, 0 }
   0xb   : > { %p539_p4 = por %p55_p2, %p54_p1  ;;  %s40_s17 = ssub.s32 %s480_s10, %s631_s14 }
   0xc   : > { %p86_p6 = scmp.eq.s32.totalorder %s293_s12, 1  ;;  %p45_p7 = scmp.eq.s32.totalorder %s40_s17, 0 }
   0xd   : > { %p545_p8 = por %p61_p5, %p60_p3  ;;  %p92_p10 = scmp.eq.s32.totalorder %s294_s13, 1 }
   0xe   : > { %p549_p9 = por %p86_p6, %p54_p1  ;;  %p296_p12 = scmp.ge.s32.totalorder %s484_s11, 2 }
   0xf   : > { %s554_s20 = scalar_select %p45_p7, %s472_s8, %s47_s15  }
  0x10   : > { %p556_p11 = por %p92_p10, %p60_p3  ;;  %p320_p13 = scmp.lt.s32.totalorder %s484_s11, 2 }
  0x11   : > { %s112_s22 = sand.u32 1, %s472_s8   ;;  %s307_s24 = sshll.u32 %s480_s10, 3 }
  0x12   : > { %s297_s23 = sshll.u32 %s112_s22, 3  ;;  %s124_s27 = scalar_lea.hbm %s619_s0, %s307_s24 }
  0x13   : > { %s116_s28 = scalar_lea.vmem [#allocation2], %s297_s23  ;;  %s125_s30 = sshll.u32 %s124_s27, 4  ;;  %s126_s30 = int_to_ptr.hbm [resolvable:$true] %s125_s30 }
  0x14   : > { %s127_s29 = sshll.u32 %s116_s28, 4  ;;  %p313_p0 = pnand %p320_p13, %p539_p4  ;;  %s128_s29 = int_to_ptr.vmem [resolvable:$true] %s127_s29 }
  0x15   : > { %p300_p1 = scmp.ge.s32.totalorder %s484_s11, 1  ;;  %s113_s2 = scalar_lea.sflag [#allocation3], %s112_s22 }
  0x16   : > { %s486_s3 = smov 32   ;;  %s487_s4 = smov 2  }
  0x17   : > { %315 = dma.hbm_to_vmem [thread:$0]  (!%p313_p0), %s126_s30, 128, %s128_s29, %s113_s2, %s486_s3, %s486_s3, %s487_s4  }
  0x18   : > { %p135_p2 = scmp.lt.s32.totalorder %s484_s11, 3 }
  0x1a   : > { %p136_p3 = pnand %p300_p1, %p135_p2 }
  0x1b   : > { %s572_s5 = sand.u32 (!%p136_p3), 1, %s468_s7  }
  0x1c   : > { %139 = sbr.rel (%p136_p3) target bundleno = 50 (0x32), region = 24  ;;  %s301_s12 = sshll.u32 (!%p136_p3), %s572_s5, 3 }
  0x1d   : > { %s142_s13 = scalar_lea.sflag (!%p136_p3), [#allocation3], %s572_s5  ;;  %s145_s15 = scalar_lea.vmem (!%p136_p3), [#allocation2], %s301_s12 }
  0x21   : > { %455 = dma.done.wait (%p545_p8), %s142_s13, 128  }
  0x22   : > { %457 = vsyncadd (%p545_p8), %s142_s13, 4294967168  ;;  %s302_s16 = sshll.u32 %s572_s5, 1  ;;  %s304_s17 = sshll.u32 %s476_s9, 1  ;;  %vm170_vm0 = vcmask 1041408   ;;  %v166_v0 = vld [vmem:[%s145_s15] sm:$0x3] }
  0x23   : > { %s202_s24 = scalar_lea.hbm %s620_s1, %s304_s17  ;;  %v167_v1 = vld [vmem:[%s145_s15 + $0x2] sm:$0x3]  ;;  %v168_v2 = vld [vmem:[%s145_s15 + $0x4] sm:$0x3]  ;;  %v169_v3 = vld [vmem:[%s145_s15 + $0x6] sm:$0x3] }
  0x24   : > { %v171_v4 = vsel %vm170_vm0, %v166_v0, -inf  ;;  %v172_v5 = vsel %vm170_vm0, %v167_v1, -inf  ;;  %v173_v6 = vsel %vm170_vm0, %v168_v2, -inf  ;;  %v174_v7 = vsel %vm170_vm0, %v169_v3, -inf  ;;  %s164_s18 = scalar_lea.vmem [#allocation5], %s302_s16  ;;  %s206_s26 = sshll.u32 %s202_s24, 4  ;;  %s207_s26 = int_to_ptr.hbm [resolvable:$true] %s206_s26 }
  0x25   : > { %v175_v8 = vmax.f32 %v171_v4, %v172_v5  ;;  %s204_s25 = sshll.u32 %s164_s18, 4  ;;  %v176_v9 = vmax.f32 %v173_v6, %v174_v7  ;;  %s191_s9 = scalar_lea.sflag [#allocation4], %s572_s5  ;;  %s205_s25 = int_to_ptr.vmem [resolvable:$true] %s204_s25 }
  0x26   : > { %s416_s27 = sshra.s32 %s207_s26, 4  ;;  %s422_s2 = scalar_lea.hbm %s620_s1, 4  ;;  %s417_s27 = int_to_ptr.hbm [resolvable:$true] %s416_s27 }
  0x27   : > { %v177_v10 = vmax.f32 %v175_v8, %v176_v9  ;;  %s418_s28 = scalar_lea.hbm %s417_s27, 2  ;;  %p423_p7 = scmp.lt.s32.totalorder %s417_s27, %s620_s1 }
  0x28   : > { %p419_p4 = scmp.ne.s32.totalorder %s417_s27, %s418_s28  ;;  %p424_p8 = scmp.lt.s32.totalorder %s422_s2, %s418_s28 }
  0x29   : > { %182 = vst [vmem:[%s164_s18] sm:$0x3] %v177_v10 }
  0x2a   : > { %p420_p5 = pnand %p419_p4, %p549_p9  ;;  %p425_p10 = por %p424_p8, %p423_p7 }
  0x2c   : > { %p421_p6 = pneg %p420_p5 }
  0x2e   : > { %p426_p13 = pnand %p425_p10, %p421_p6 }
  0x30   : > { %429 = shalt.err (!%p426_p13)
}
  0x31   : > { %310 = dma.vmem_to_hbm [thread:$0]  (%p549_p9), %s205_s25, 32, %s207_s26, %s191_s9  }
  0x32 PF: > { %s218_s5 = sand.u32 1, %s464_s6   ;;  %p317_p0 = pnand %p296_p12, %p556_p11 }
  0x33   : > { %s219_s12 = scalar_lea.sflag [#allocation4], %s218_s5 }
  0x34   : > { %p318_p1 = pneg %p317_p0 }
  0x36   : > { %459 = dma.done.wait (%p318_p1), %s219_s12, 32  }
  0x37   : > { %461 = vsyncadd (%p318_p1), %s219_s12, 4294967264  ;;  %s17_s11 = sadd.s32 1, %s484_s11   ;;  %s625_s6 = smov %s468_s7 }
  0x38   : > { %p14_p2 = scmp.ge.s32.totalorder %s17_s11, 4   ;;  %s626_s7 = smov %s472_s8 }
  0x39   : > { %s627_s8 = smov %s554_s20  ;;  %s628_s9 = smov %s480_s10 }
  0x3a   : > { %s629_s10 = smov %s631_s14  ;;  %16 = sbr.rel (!%p14_p2) target bundleno = 6 (0x6), region = 77 }
  0x3f   :  { %225 = vsyncpa [#allocation3], 1 }
  0x40   :  { %227 = vsyncpa [#allocation3 + $0x1], 1 }
  0x41   :  { %228 = vsyncpa [#allocation4], 1 }
  0x42   :  { %230 = vsyncpa [#allocation4 + $0x1], 1 }

</bundles_post_ra>
